<compile_context>
chip_gen: v6e
topology: v6e:2x2x1
jax: 0.10.0
libtpu: 0.0.40
codegen_flags: <defaults>
</compile_context>

<pallas_src>
import functools

import jax
import jax.numpy as jnp
from jax import lax
from jax.experimental import pallas as pl
from jax.experimental.pallas import tpu as pltpu


def _round_up(x: int, m: int) -> int:
    return ((x + m - 1) // m) * m


def _pad_value(dtype):
    """Identity element for max (so masked lanes never win)."""
    dtype = jnp.dtype(dtype)
    if jnp.issubdtype(dtype, jnp.floating):
        return float("-inf")
    if jnp.issubdtype(dtype, jnp.integer):
        return int(jnp.iinfo(dtype).min)
    return False  # bool


def _sublane_multiple(dtype) -> int:
    # f32 -> 8 sublanes, bf16/f16 -> 16, int8/fp8 -> 32 (keep packed vregs full).
    itemsize = jnp.dtype(dtype).itemsize
    return max(8, 8 * (4 // max(itemsize, 1)))


def _make_single_tile_kernel(ts: int, spatial: int, fill):
    """Fast path: the whole spatial extent fits one block. Grid = (row_blocks,)."""
    groups = ts // 128

    def kernel(x_ref, o_ref):
        def load_group(c):
            v = x_ref[:, c * 128:(c + 1) * 128]
            if (c + 1) * 128 > spatial:  # static: this lane-group can run past `spatial`
                lane = lax.broadcasted_iota(jnp.int32, v.shape, 1)
                v = jnp.where(c * 128 + lane < spatial, v, fill)
            return v

        part = load_group(0)
        for c in range(1, groups):
            part = jnp.maximum(part, load_group(c))
        o_ref[...] = part  # lane-dense (tr, 128) partial; wrapper finishes 128 -> 1

    return kernel


def _make_multi_tile_kernel(ts: int, spatial: int, num_k: int, fill):
    """Streaming path. Grid = (row_blocks, spatial_blocks); spatial (last) is the reduction."""
    groups = ts // 128
    last_start = (num_k - 1) * ts  # only the last k block can be partial

    def kernel(x_ref, o_ref, acc_ref):
        k = pl.program_id(1)

        def load_group(c):
            v = x_ref[:, c * 128:(c + 1) * 128]
            if last_start + (c + 1) * 128 > spatial:  # static: group may be partial on last k
                lane = lax.broadcasted_iota(jnp.int32, v.shape, 1)
                v = jnp.where(k * ts + c * 128 + lane < spatial, v, fill)
            return v

        # Fold the (tr, ts) tile into a lane-dense (tr, 128) partial max (VPU only).
        part = load_group(0)
        for c in range(1, groups):
            part = jnp.maximum(part, load_group(c))

        @pl.when(k == 0)
        def _init():
            acc_ref[...] = part

        @pl.when(k > 0)
        def _accumulate():
            acc_ref[...] = jnp.maximum(acc_ref[...], part)

        @pl.when(k == pl.num_programs(1) - 1)
        def _finalize():
            o_ref[...] = acc_ref[...]

    return kernel


@functools.partial(jax.jit, static_argnames=("tr_target", "block_byte_budget"))
def global_max_pool2d(x: jax.Array, *, tr_target: int = 512,
                      block_byte_budget: int = 4 * 1024 * 1024) -> jax.Array:
    """Equivalent of F.max_pool2d(x, kernel_size=x.shape[2:]) for NCHW input."""
    N, C, H, W = x.shape
    rows, spatial = N * C, H * W
    dtype = x.dtype
    itemsize = jnp.dtype(dtype).itemsize
    fill = _pad_value(dtype)

    x2d = x.reshape(rows, spatial)

    # --- row tiling: sublane-aligned blocks; prefer >=2 row blocks (v7x megacore) ---
    sub = _sublane_multiple(dtype)
    rows_al = _round_up(rows, sub)
    tr = _round_up(min(tr_target, rows_al), sub)
    if pl.cdiv(rows, tr) < 2 and rows_al >= 2 * sub:
        tr = _round_up(-(-rows // 2), sub)  # split so both TensorCores get row blocks

    # --- spatial tiling: byte budget (dtype-aware), lane (128) granular ---
    ts_budget = max(128, (block_byte_budget // (tr * itemsize)) // 128 * 128)
    spatial_al = _round_up(spatial, 128)
    ts = min(ts_budget, spatial_al)
    num_r = pl.cdiv(rows, tr)
    num_k = pl.cdiv(spatial, ts)

    cost = pl.CostEstimate(
        flops=rows * spatial,  # comparisons counted as flops (advisory only)
        transcendentals=0,
        bytes_accessed=rows * spatial * itemsize + rows * 128 * itemsize,
    )

    if num_k == 1:
        # Fast path: single spatial block, no scratch, no reduction axis.
        out2d = pl.pallas_call(
            _make_single_tile_kernel(ts, spatial, fill),
            out_shape=jax.ShapeDtypeStruct((rows, 128), dtype),
            grid_spec=pltpu.PrefetchScalarGridSpec(
                num_scalar_prefetch=0,
                grid=(num_r,),
                in_specs=[pl.BlockSpec((tr, ts), lambda i: (i, 0))],
                out_specs=pl.BlockSpec((tr, 128), lambda i: (i, 0)),
            ),
            compiler_params=pltpu.CompilerParams(dimension_semantics=("parallel",)),
            cost_estimate=cost,
        )(x2d)
    else:
        # Streaming path: rows "parallel", spatial "arbitrary" (reduction, last).
        out2d = pl.pallas_call(
            _make_multi_tile_kernel(ts, spatial, num_k, fill),
            out_shape=jax.ShapeDtypeStruct((rows, 128), dtype),
            grid_spec=pltpu.PrefetchScalarGridSpec(
                num_scalar_prefetch=0,
                grid=(num_r, num_k),
                in_specs=[pl.BlockSpec((tr, ts), lambda i, k: (i, k))],
                # Same output block across k -> resident across the reduction axis.
                out_specs=pl.BlockSpec((tr, 128), lambda i, k: (i, 0)),
                scratch_shapes=[pltpu.VMEM((tr, 128), dtype)],
            ),
            compiler_params=pltpu.CompilerParams(
                dimension_semantics=("parallel", "arbitrary")),
            cost_estimate=cost,
        )(x2d)

    # Final 128 -> 1 reduce of the lane-dense partial (tiny XLA op), then NCHW shape.
    return jnp.max(out2d, axis=1).reshape(N, C, 1, 1)


if __name__ == "__main__":
    key = jax.random.PRNGKey(0)
    k1, k2, k3, k4 = jax.random.split(key, 4)

    # Case 1: aligned small shape (module's typical toy input) — fast path.
    x = jax.random.normal(k1, (2, 4, 16, 16), dtype=jnp.float32)
    out = global_max_pool2d(x)
    jax.block_until_ready(out)
    ref = jnp.max(x, axis=(2, 3), keepdims=True)
    assert out.shape == (2, 4, 1, 1), out.shape
    assert out.dtype == x.dtype
    assert jnp.allclose(out, ref), "mismatch (aligned fast path)"

    # Case 2: non-(8,128)-aligned, all-negative values — exercises in-kernel lane masking.
    x2 = -jnp.abs(jax.random.normal(k2, (2, 3, 7, 9), dtype=jnp.float32)) - 1.0
    out2 = global_max_pool2d(x2)
    jax.block_until_ready(out2)
    ref2 = jnp.max(x2, axis=(2, 3), keepdims=True)
    assert out2.shape == (2, 3, 1, 1), out2.shape
    assert jnp.allclose(out2, ref2), "mismatch (masked fast path)"

    # Case 3: unaligned spatial with >=2 row blocks — masked last lane-group, fast path.
    x3 = jax.random.normal(k3, (2, 8, 40, 40), dtype=jnp.float32)
    out3 = global_max_pool2d(x3)
    jax.block_until_ready(out3)
    ref3 = jnp.max(x3, axis=(2, 3), keepdims=True)
    assert out3.shape == (2, 8, 1, 1), out3.shape
    assert jnp.allclose(out3, ref3), "mismatch (multi-row-block fast path)"

    # Case 4: force the multi-spatial-tile (accumulator) path with a partial last k block
    # by shrinking the per-block byte budget.
    out4 = global_max_pool2d(x3, block_byte_budget=16 * 1024)
    jax.block_until_ready(out4)
    assert jnp.allclose(out4, ref3), "mismatch (multi-tile accumulator path, masked)"

    # Case 5: multi-spatial-tile path with an exactly-divisible spatial extent.
    x5 = jax.random.normal(k4, (1, 8, 32, 32), dtype=jnp.float32)
    out5 = global_max_pool2d(x5, block_byte_budget=16 * 1024)
    jax.block_until_ready(out5)
    ref5 = jnp.max(x5, axis=(2, 3), keepdims=True)
    assert jnp.allclose(out5, ref5), "mismatch (multi-tile, aligned)"

    # Case 6: bf16 (dtype-aware sublane packing / tile sizing).
    x6 = jax.random.normal(k4, (2, 4, 16, 16), dtype=jnp.bfloat16)
    out6 = global_max_pool2d(x6)
    jax.block_until_ready(out6)
    ref6 = jnp.max(x6, axis=(2, 3), keepdims=True)
    assert out6.dtype == jnp.bfloat16
    assert jnp.array_equal(out6, ref6), "mismatch (bf16)"

    print("KERNEL_OK")
</pallas_src>

<mosaic_0001>
module attributes {stable_mosaic.version = 11 : i64} {
  func.func @kernel(%arg0: i32, %arg1: memref<8x256xf32, #tpu.memory_space<vmem>>, %arg2: memref<8x128xf32, #tpu.memory_space<vmem>>) attributes {dimension_semantics = [#tpu.dimension_semantics<parallel>], iteration_bounds = array<i64: 1>, scalar_prefetch = 0 : i64, scratch_operands = 0 : i64, tpu.core_type = #tpu.core_type<tc>, window_params = [{transform_indices = @transform_0, window_bounds = array<i64: 8, 256>}, {transform_indices = @transform_1, window_bounds = array<i64: 8, 128>}]} {
    %c0 = arith.constant 0 : index
    %c0_0 = arith.constant 0 : index
    %0 = vector.load %arg1[%c0, %c0_0] : memref<8x256xf32, #tpu.memory_space<vmem>>, vector<8x128xf32>
    %c0_1 = arith.constant 0 : index
    %c128 = arith.constant 128 : index
    %1 = vector.load %arg1[%c0_1, %c128] : memref<8x256xf32, #tpu.memory_space<vmem>>, vector<8x128xf32>
    %2 = arith.maximumf %0, %1 : vector<8x128xf32>
    %c0_2 = arith.constant 0 : index
    %c0_3 = arith.constant 0 : index
    %3 = vector.load %arg2[%c0_2, %c0_3] : memref<8x128xf32, #tpu.memory_space<vmem>>, vector<8x128xf32>
    tpu.vector_store %arg2[%c0_2, %c0_3], %2 {strides = array<i32>} : memref<8x128xf32, #tpu.memory_space<vmem>>, vector<8x128xf32>,
    return
  }
  func.func @transform_0(%arg0: i32) -> (i32, i32) {
    %c0_i32 = arith.constant 0 : i32
    %c0_i32_0 = arith.constant 0 : i32
    return %arg0, %c0_i32 : i32, i32
  }
  func.func @transform_1(%arg0: i32) -> (i32, i32) {
    %c0_i32 = arith.constant 0 : i32
    %c0_i32_0 = arith.constant 0 : i32
    return %arg0, %c0_i32 : i32, i32
  }
}

</mosaic_0001>

<bundles_post_ra>
// kernel: global_max_pool2d.1
= control target key start
LH: loop header
LB: loop body
LE: loop exit
PB: predicated region body
PF: predicated region fallthrough
CT: control target
= control target key end

     0   :  { %s35_s0 = inlined_call_operand.vmem [shape: f32[8,256], index: 0, kind: input, shape index: {}]   ;;  %s36_s1 = inlined_call_operand.vmem [shape: f32[8,128], index: 1, kind: output, shape index: {}]  }
   0x1   :  { %v8_v0 = vld [vmem:[%s35_s0] sm:$0xff]  ;;  %v9_v1 = vld [vmem:[%s35_s0 + $0x8] sm:$0xff] }
   0x2   :  { %v10_v2 = vmax.f32 %v8_v0, %v9_v1 }
   0x4   :  { %11 = vst [vmem:[%s36_s1] sm:$0xff] %v10_v2 }

</bundles_post_ra>
